<compile_context>
chip_gen: v5e
topology: v5e:2x2
jax: 0.10.0
libtpu: 0.0.40
codegen_flags: <defaults>
</compile_context>

<pallas_src>
import functools

import jax
import jax.numpy as jnp
from jax.experimental import pallas as pl
from jax.experimental.pallas import tpu as pltpu

_LANE = 128      # vreg lane width
_SUBLANE = 8     # vreg sublane count (f32)


def _round_up(n, m):
    return ((n + m - 1) // m) * m


def _pad_axis(a, axis, target):
    pad = target - a.shape[axis]
    if pad <= 0:
        return a
    widths = [(0, 0)] * a.ndim
    widths[axis] = (0, pad)
    return jnp.pad(a, widths)


# ----------------------------------------------------------------------------
# Pallas kernel: one ensemble head per grid step (fused 2-layer MLP)
# ----------------------------------------------------------------------------
def _ensemble_mlp_kernel(x_ref, w1_ref, b1_ref, w2_ref, b2_ref, o_ref):
    # Layer 1: x @ w1 + b1, ReLU  (MXU matmul, f32 accumulate; VPU bias+ReLU
    # on full 128-lane vregs). h stays f32 — no cast round-trip before dot 2.
    h = jnp.dot(x_ref[...], w1_ref[...], preferred_element_type=jnp.float32)
    h = jnp.maximum(h + b1_ref[...], 0.0)
    # Layer 2: h @ w2 + b2; output store is 128-lane dense (unmasked vst).
    y = jnp.dot(h, w2_ref[...], preferred_element_type=jnp.float32)
    o_ref[...] = (y + b2_ref[...]).astype(o_ref.dtype)


@functools.partial(jax.jit, static_argnames=("out_dim",))
def ensemble_mlp_forward(x, w1, b1, w2, b2, *, out_dim):
    """Fused forward of K stacked MLP heads in ONE pallas_call.

    x : [batch, in_dim]                    (un-padded)
    w1: [K, in_p, hid_p]   b1: [K, 1, hid_p]   (lane-padded, zero fill)
    w2: [K, hid_p, out_p]  b2: [K, 1, out_p]
    returns [K, batch, out_dim]
    """
    num_heads, in_p, hid_p = w1.shape
    out_p = w2.shape[2]
    batch, feat = x.shape
    batch_p = _round_up(max(batch, 1), _SUBLANE)
    # Zero-pad activations so the x block is (8,128)-aligned; zero padding is
    # exact (padded input lanes hit zero weight rows, padded hidden lanes have
    # zero weights/bias -> relu(0)=0 contributes nothing).
    x = jnp.pad(x, ((0, batch_p - batch), (0, in_p - feat)))

    out = pl.pallas_call(
        _ensemble_mlp_kernel,
        out_shape=jax.ShapeDtypeStruct((num_heads, batch_p, out_p), jnp.float32),
        grid=(num_heads,),
        in_specs=[
            # x: same block for every head -> fetched once, VMEM-resident.
            pl.BlockSpec((batch_p, in_p), lambda k: (0, 0)),
            # Per-head weights/biases: head axis squeezed off the kernel refs;
            # head k+1 is prefetched while head k computes (auto double-buffer).
            pl.BlockSpec((pl.Squeezed(), in_p, hid_p), lambda k: (k, 0, 0)),
            pl.BlockSpec((pl.Squeezed(), 1, hid_p), lambda k: (k, 0, 0)),
            pl.BlockSpec((pl.Squeezed(), hid_p, out_p), lambda k: (k, 0, 0)),
            pl.BlockSpec((pl.Squeezed(), 1, out_p), lambda k: (k, 0, 0)),
        ],
        out_specs=pl.BlockSpec((pl.Squeezed(), batch_p, out_p),
                               lambda k: (k, 0, 0)),
        compiler_params=pltpu.CompilerParams(
            # Heads are independent -> shards across both TCs on v7x; no-op
            # on single-TC v5e/v6e.
            dimension_semantics=("parallel",)),
    )(x, w1, b1, w2, b2)
    # Strip sublane/lane padding outside the kernel.
    return out[:, :batch, :out_dim]


# ----------------------------------------------------------------------------
# EnsembleModel: dict-of-models dispatcher (mirrors nn.ModuleDict semantics)
# ----------------------------------------------------------------------------
class EnsembleModel:
    """JAX/Pallas port of the PyTorch EnsembleModel.

    `models` maps key -> {'w1': [in,hid], 'b1': [1,hid],
                          'w2': [hid,out], 'b2': [1,out]}.
    Heads are stacked & lane-padded ONCE at construction so forward() is a
    single fused pallas_call over a head grid axis.
    """
    # TODO(synk): arbitrary heterogeneous submodules (different architectures /
    # shapes per key) cannot be stacked into one kernel; heads are assumed to
    # be identically-shaped 2-layer MLPs.

    def __init__(self, models):
        self.keys = list(models.keys())
        p0 = models[self.keys[0]]
        self.in_dim = p0["w1"].shape[0]
        self.hidden = p0["w1"].shape[1]
        self.out_dim = p0["w2"].shape[1]
        in_p = _round_up(self.in_dim, _LANE)
        hid_p = _round_up(self.hidden, _LANE)
        out_p = _round_up(self.out_dim, _LANE)

        def stack(name):
            return jnp.stack([models[k][name] for k in self.keys], axis=0)

        # One-time packing + zero padding to 128-lane dense blocks.
        self.w1 = _pad_axis(_pad_axis(stack("w1"), 1, in_p), 2, hid_p)
        self.b1 = _pad_axis(stack("b1"), 2, hid_p)
        self.w2 = _pad_axis(_pad_axis(stack("w2"), 1, hid_p), 2, out_p)
        self.b2 = _pad_axis(stack("b2"), 2, out_p)

    def forward(self, batch, select_key=None, training=False):
        # `training` kept for signature parity; MLP heads have no
        # train/eval-dependent behavior.
        del training
        if select_key is None:
            keys = self.keys
            w1, b1, w2, b2 = self.w1, self.b1, self.w2, self.b2
        else:
            # Same stacked layout, grid of 1 over the selected head.
            idx = self.keys.index(select_key)
            keys = [select_key]
            w1 = self.w1[idx:idx + 1]
            b1 = self.b1[idx:idx + 1]
            w2 = self.w2[idx:idx + 1]
            b2 = self.b2[idx:idx + 1]
        out = ensemble_mlp_forward(batch, w1, b1, w2, b2, out_dim=self.out_dim)
        return {k: out[i] for i, k in enumerate(keys)}

    __call__ = forward


# ----------------------------------------------------------------------------
# Deterministic parameter construction + smoke test
# ----------------------------------------------------------------------------
def _make_head_params(key, in_dim, hidden, out_dim):
    k1, k2, k3, k4 = jax.random.split(key, 4)
    scale1 = 1.0 / jnp.sqrt(jnp.float32(in_dim))
    scale2 = 1.0 / jnp.sqrt(jnp.float32(hidden))
    return {
        "w1": jax.random.normal(k1, (in_dim, hidden), jnp.float32) * scale1,
        "b1": 0.1 * jax.random.normal(k3, (1, hidden), jnp.float32),
        "w2": jax.random.normal(k2, (hidden, out_dim), jnp.float32) * scale2,
        "b2": 0.1 * jax.random.normal(k4, (1, out_dim), jnp.float32),
    }


if __name__ == "__main__":
    root = jax.random.PRNGKey(0)
    k_x, k_a, k_b, k_c = jax.random.split(root, 4)

    batch, in_dim, hidden, out_dim = 8, 32, 64, 16
    x = jax.random.normal(k_x, (batch, in_dim), jnp.float32)

    models = {
        "head_a": _make_head_params(k_a, in_dim, hidden, out_dim),
        "head_b": _make_head_params(k_b, in_dim, hidden, out_dim),
        "head_c": _make_head_params(k_c, in_dim, hidden, out_dim),
    }
    ensemble = EnsembleModel(models)

    def ref_head(p):
        return jnp.maximum(x @ p["w1"] + p["b1"], 0.0) @ p["w2"] + p["b2"]

    # Full ensemble forward (all keys) — one fused pallas_call.
    preds = ensemble(x, select_key=None, training=False)
    preds = {k: jax.block_until_ready(v) for k, v in preds.items()}
    assert set(preds.keys()) == set(models.keys())
    for k in models:
        assert preds[k].shape == (batch, out_dim), (k, preds[k].shape)
        assert jnp.allclose(preds[k], ref_head(models[k]), atol=1e-4, rtol=1e-4), k

    # select_key path: only the requested head is evaluated (grid of 1).
    sel = ensemble(x, select_key="head_b", training=False)
    sel = {k: jax.block_until_ready(v) for k, v in sel.items()}
    assert list(sel.keys()) == ["head_b"]
    assert jnp.allclose(sel["head_b"], ref_head(models["head_b"]),
                        atol=1e-4, rtol=1e-4)

    print("KERNEL_OK")
</pallas_src>

<mosaic_0001>
module attributes {stable_mosaic.version = 11 : i64} {
  func.func @_ensemble_mlp_kernel(%arg0: i32, %arg1: memref<8x128xf32, #tpu.memory_space<vmem>>, %arg2: memref<1x128x128xf32, #tpu.memory_space<vmem>>, %arg3: memref<1x1x128xf32, #tpu.memory_space<vmem>>, %arg4: memref<1x128x128xf32, #tpu.memory_space<vmem>>, %arg5: memref<1x1x128xf32, #tpu.memory_space<vmem>>, %arg6: memref<1x8x128xf32, #tpu.memory_space<vmem>>) attributes {dimension_semantics = [#tpu.dimension_semantics<parallel>], iteration_bounds = array<i64: 3>, scalar_prefetch = 0 : i64, scratch_operands = 0 : i64, tpu.core_type = #tpu.core_type<tc>, window_params = [{pipeline_mode = #tpu.pipeline_mode<synchronous>, transform_indices = @transform_0, window_bounds = array<i64: 8, 128>}, {transform_indices = @transform_1, window_bounds = array<i64: 1, 128, 128>}, {transform_indices = @transform_2, window_bounds = array<i64: 1, 1, 128>}, {transform_indices = @transform_3, window_bounds = array<i64: 1, 128, 128>}, {transform_indices = @transform_4, window_bounds = array<i64: 1, 1, 128>}, {transform_indices = @transform_5, window_bounds = array<i64: 1, 8, 128>}]} {
    %c0 = arith.constant 0 : index
    %c0_0 = arith.constant 0 : index
    %0 = vector.load %arg1[%c0, %c0_0] : memref<8x128xf32, #tpu.memory_space<vmem>>, vector<8x128xf32>
    %c0_1 = arith.constant 0 : index
    %c0_2 = arith.constant 0 : index
    %c0_3 = arith.constant 0 : index
    %1 = vector.load %arg2[%c0_1, %c0_2, %c0_3] : memref<1x128x128xf32, #tpu.memory_space<vmem>>, vector<1x128x128xf32>
    %2 = vector.shape_cast %1 : vector<1x128x128xf32> to vector<128x128xf32>
    %cst = arith.constant dense<0.000000e+00> : vector<8x128xf32>
    %3 = tpu.matmul %0, %2, %cst {dimension_numbers = #tpu.dot_dimension_numbers<[1], [0], [0], [1], [0, 0, 1, 1], [], []>} : vector<8x128xf32>, vector<128x128xf32>, vector<8x128xf32> -> vector<8x128xf32>
    %c0_4 = arith.constant 0 : index
    %c0_5 = arith.constant 0 : index
    %c0_6 = arith.constant 0 : index
    %4 = vector.load %arg3[%c0_4, %c0_5, %c0_6] : memref<1x1x128xf32, #tpu.memory_space<vmem>>, vector<1x1x128xf32>
    %5 = vector.shape_cast %4 : vector<1x1x128xf32> to vector<1x128xf32>
    %6 = vector.broadcast %5 : vector<1x128xf32> to vector<8x128xf32>
    %7 = arith.addf %3, %6 : vector<8x128xf32>
    %cst_7 = arith.constant 0.000000e+00 : f32
    %8 = vector.broadcast %cst_7 : f32 to vector<8x128xf32>
    %9 = arith.maximumf %7, %8 : vector<8x128xf32>
    %c0_8 = arith.constant 0 : index
    %c0_9 = arith.constant 0 : index
    %c0_10 = arith.constant 0 : index
    %10 = vector.load %arg4[%c0_8, %c0_9, %c0_10] : memref<1x128x128xf32, #tpu.memory_space<vmem>>, vector<1x128x128xf32>
    %11 = vector.shape_cast %10 : vector<1x128x128xf32> to vector<128x128xf32>
    %cst_11 = arith.constant dense<0.000000e+00> : vector<8x128xf32>
    %12 = tpu.matmul %9, %11, %cst_11 {dimension_numbers = #tpu.dot_dimension_numbers<[1], [0], [0], [1], [0, 0, 1, 1], [], []>} : vector<8x128xf32>, vector<128x128xf32>, vector<8x128xf32> -> vector<8x128xf32>
    %c0_12 = arith.constant 0 : index
    %c0_13 = arith.constant 0 : index
    %c0_14 = arith.constant 0 : index
    %13 = vector.load %arg5[%c0_12, %c0_13, %c0_14] : memref<1x1x128xf32, #tpu.memory_space<vmem>>, vector<1x1x128xf32>
    %14 = vector.shape_cast %13 : vector<1x1x128xf32> to vector<1x128xf32>
    %15 = vector.broadcast %14 : vector<1x128xf32> to vector<8x128xf32>
    %16 = arith.addf %12, %15 : vector<8x128xf32>
    %c0_15 = arith.constant 0 : index
    %c0_16 = arith.constant 0 : index
    %c0_17 = arith.constant 0 : index
    %17 = vector.load %arg6[%c0_15, %c0_16, %c0_17] : memref<1x8x128xf32, #tpu.memory_space<vmem>>, vector<1x8x128xf32>
    %18 = vector.shape_cast %17 : vector<1x8x128xf32> to vector<8x128xf32>
    %19 = vector.shape_cast %16 : vector<8x128xf32> to vector<1x8x128xf32>
    tpu.vector_store %arg6[%c0_15, %c0_16, %c0_17], %19 {strides = array<i32>} : memref<1x8x128xf32, #tpu.memory_space<vmem>>, vector<1x8x128xf32>,
    return
  }
  func.func @transform_0(%arg0: i32) -> (i32, i32) {
    %c0_i32 = arith.constant 0 : i32
    %c0_i32_0 = arith.constant 0 : i32
    %c0_i32_1 = arith.constant 0 : i32
    return %c0_i32, %c0_i32_0 : i32, i32
  }
  func.func @transform_1(%arg0: i32) -> (i32, i32, i32) {
    %c0_i32 = arith.constant 0 : i32
    %c0_i32_0 = arith.constant 0 : i32
    %c0_i32_1 = arith.constant 0 : i32
    return %arg0, %c0_i32, %c0_i32_0 : i32, i32, i32
  }
  func.func @transform_2(%arg0: i32) -> (i32, i32, i32) {
    %c0_i32 = arith.constant 0 : i32
    %c0_i32_0 = arith.constant 0 : i32
    %c0_i32_1 = arith.constant 0 : i32
    return %arg0, %c0_i32, %c0_i32_0 : i32, i32, i32
  }
  func.func @transform_3(%arg0: i32) -> (i32, i32, i32) {
    %c0_i32 = arith.constant 0 : i32
    %c0_i32_0 = arith.constant 0 : i32
    %c0_i32_1 = arith.constant 0 : i32
    return %arg0, %c0_i32, %c0_i32_0 : i32, i32, i32
  }
  func.func @transform_4(%arg0: i32) -> (i32, i32, i32) {
    %c0_i32 = arith.constant 0 : i32
    %c0_i32_0 = arith.constant 0 : i32
    %c0_i32_1 = arith.constant 0 : i32
    return %arg0, %c0_i32, %c0_i32_0 : i32, i32, i32
  }
  func.func @transform_5(%arg0: i32) -> (i32, i32, i32) {
    %c0_i32 = arith.constant 0 : i32
    %c0_i32_0 = arith.constant 0 : i32
    %c0_i32_1 = arith.constant 0 : i32
    return %arg0, %c0_i32, %c0_i32_0 : i32, i32, i32
  }
}

</mosaic_0001>

<bundles_post_ra>
// kernel: ensemble_mlp_forward.1
= control target key start
LH: loop header
LB: loop body
LE: loop exit
PB: predicated region body
PF: predicated region fallthrough
CT: control target
= control target key end

     0   :  { %s986_s0 = inlined_call_operand.vmem [shape: f32[8,128], index: 0, kind: input, shape index: {}]   ;;  %s987_s1 = inlined_call_operand.hbm [shape: f32[3,128,128], index: 1, kind: input, shape index: {}]   ;;  %s988_s2 = inlined_call_operand.vmem [shape: f32[3,1,128], index: 2, kind: input, shape index: {}]   ;;  %s989_s3 = inlined_call_operand.hbm [shape: f32[3,128,128], index: 3, kind: input, shape index: {}]   ;;  %s990_s4 = inlined_call_operand.vmem [shape: f32[3,1,128], index: 4, kind: input, shape index: {}]   ;;  %s991_s5 = inlined_call_operand.hbm [shape: f32[3,8,128], index: 5, kind: output, shape index: {}]  }
   0x1   :  { %994 = sst [smem:[#allocation13_spill]] %s987_s1 }
   0x2   :  { %10 = vsyncpa [#allocation3], 0 }
   0x3   :  { %12 = vsyncpa [#allocation3 + $0x1], 0 }
   0x4   :  { %13 = vsyncpa [#allocation6], 0 }
   0x5   :  { %15 = vsyncpa [#allocation6 + $0x1], 0 }
   0x6   :  { %16 = vsyncpa [#allocation4], 0 }
   0x7   :  { %18 = vsyncpa [#allocation4 + $0x1], 0  ;;  %s763_s18 = smov 0   ;;  %s765_s19 = smov 0  }
   0x8   :  { %s767_s20 = smov 0   ;;  %s769_s21 = smov 0  }
   0x9 LB: > { %995 = sst [smem:[#allocation11_spill]] %s725_s20  ;;  %s784_s22 = sadd.s32 4294967295, %s729_s21   ;;  %s729_s21 = sphi %s769_s21, %s1009_s21   ;;  %s725_s20 = sphi %s767_s20, %s1006_s20   ;;  %s721_s19 = sphi %s765_s19, %s1008_s19   ;;  %s717_s18 = sphi %s763_s18, %s1007_s18  }
   0xa   : > { %s525_s23 = sadd.s32 4294967294, %s729_s21   ;;  %s788_s24 = sadd.s32 1, %s729_s21  }
   0xb   : > { %s52_s25 = sadd.s32 1, %s725_s20  ;;  %s49_s26 = ssub.s32 %s729_s21, %s788_s24 }
   0xc   : > { %p59_p0 = scmp.ne.s32.totalorder %s725_s20, %s721_s19  ;;  %p50_p1 = scmp.eq.s32.totalorder %s49_s26, 0 }
   0xd   : > { %p60_p2 = scmp.eq.s32.totalorder %s729_s21, 0  ;;  %p65_p3 = scmp.ne.s32.totalorder %s721_s19, %s717_s18 }
   0xe   : > { %p66_p4 = scmp.eq.s32.totalorder %s784_s22, 0  ;;  %p167_p7 = scmp.eq.s32.totalorder %s784_s22, 2 }
   0xf   : > { %s800_s27 = scalar_select %p50_p1, %s725_s20, %s52_s25  }
  0x10   : > { %p802_p5 = por %p60_p2, %p59_p0  ;;  %p806_p6 = por %p66_p4, %p65_p3 }
  0x11   : > { %996 = sst [smem:[#allocation12_spill]] %s800_s27  ;;  %p173_p8 = scmp.eq.s32.totalorder %s525_s23, 2 }
  0x12   : > { %p561_p9 = scmp.lt.s32.totalorder %s729_s21, 3  ;;  %p812_p10 = por %p167_p7, %p59_p0 }
  0x13   : > { %p816_p11 = por %p173_p8, %p65_p3  ;;  %s821_s7 = sand.u32 1, %s725_s20  }
  0x14   : > { %s542_s8 = sshll.u32 %s729_s21, 7  ;;  %s992_s9 = sshll.u32 %s821_s7, 7 }
  0x15   : > { %s1001_s1 = sld [smem:[#allocation13_spill]]  ;;  %s200_s14 = scalar_lea.vmem [#allocation2], %s992_s9 }
  0x16   : > { %s208_s15 = sshll.u32 %s200_s14, 4  ;;  %p834_p12 = pnand %p561_p9, %p802_p5  ;;  %s209_s15 = int_to_ptr.vmem [resolvable:$true] %s208_s15 }
  0x17   : > { %p534_p13 = scmp.ge.s32.totalorder %s729_s21, 1  ;;  %p250_p0 = scmp.lt.s32.totalorder %s729_s21, 4 }
  0x18   : > { %s197_s17 = scalar_lea.sflag [#allocation3], %s821_s7  ;;  %p603_p2 = pneg %p834_p12 }
  0x1b   : > { %s205_s12 = scalar_lea.hbm %s1001_s1, %s542_s8  ;;  %s606_s10 = scalar_lea.hbm %s1001_s1, 384 }
  0x1c   : > { %s206_s13 = sshll.u32 %s205_s12, 4  ;;  %s207_s13 = int_to_ptr.hbm [resolvable:$true] %s206_s13 }
  0x1d   : > { %s599_s23 = sshra.s32 %s207_s13, 4  ;;  %s600_s23 = int_to_ptr.hbm [resolvable:$true] %s599_s23 }
  0x1e   : > { %s601_s25 = scalar_lea.hbm %s600_s23, 128  ;;  %p607_p5 = scmp.lt.s32.totalorder %s600_s23, %s1001_s1 }
  0x1f   : > { %p602_p1 = scmp.ne.s32.totalorder %s600_s23, %s601_s25  ;;  %p608_p7 = scmp.lt.s32.totalorder %s606_s10, %s601_s25 }
  0x21   : > { %p604_p3 = pnand %p603_p2, %p602_p1  ;;  %p609_p8 = por %p608_p7, %p607_p5 }
  0x23   : > { %p605_p4 = pneg %p604_p3 }
  0x25   : > { %p610_p9 = pnand %p609_p8, %p605_p4 }
  0x27   : > { %613 = shalt.err (!%p610_p9)
}
  0x28   : > { %s731_s14 = smov 128   ;;  %s732_s9 = smov 8  }
  0x29   : > { %553 = dma.hbm_to_vmem [thread:$0]  (!%p834_p12), %s207_s13, 2048, %s209_s15, %s197_s17, %s731_s14, %s731_s14, %s732_s9  }
  0x2a   : > { %p858_p1 = pnand %p534_p13, %p250_p0  ;;  %s233_s28 = scalar_lea.hbm %s989_s3, %s542_s8 }
  0x2b   : > { %s234_s10 = sshll.u32 %s233_s28, 4  ;;  %s1004_s11 = sshll.u32 %s821_s7, 7  ;;  %s235_s10 = int_to_ptr.hbm [resolvable:$true] %s234_s10 }
  0x2c   : > { %s228_s12 = scalar_lea.vmem [#allocation5], %s1004_s11  ;;  %s225_s27 = scalar_lea.sflag [#allocation6], %s821_s7 }
  0x2d   : > { %s236_s1 = sshll.u32 %s228_s12, 4  ;;  %s629_s20 = sshra.s32 %s235_s10, 4  ;;  %s237_s1 = int_to_ptr.vmem [resolvable:$true] %s236_s1  ;;  %s630_s20 = int_to_ptr.hbm [resolvable:$true] %s629_s20 }
  0x2e   : > { %s631_s13 = scalar_lea.hbm %s630_s20, 128  ;;  %s636_s23 = scalar_lea.hbm %s989_s3, 384 }
  0x2f   : > { %p632_p3 = scmp.ne.s32.totalorder %s630_s20, %s631_s13  ;;  %p637_p4 = scmp.lt.s32.totalorder %s630_s20, %s989_s3 }
  0x30   : > { %p638_p5 = scmp.lt.s32.totalorder %s636_s23, %s631_s13 }
  0x31   : > { %p634_p13 = pnand %p632_p3, %p603_p2 }
  0x32   : > { %p639_p7 = por %p638_p5, %p637_p4 }
  0x33   : > { %p635_p0 = pneg %p634_p13 }
  0x35   : > { %p640_p8 = pnand %p639_p7, %p635_p0 }
  0x37   : > { %643 = shalt.err (!%p640_p8)
}
  0x38   : > { %556 = dma.hbm_to_vmem [thread:$0]  (!%p834_p12), %s235_s10, 2048, %s237_s1, %s225_s27, %s731_s14, %s731_s14, %s732_s9  }
  0x39   : > { %254 = sbr.rel (%p858_p1) target bundleno = 358 (0x166), region = 40  ;;  %s884_s7 = sand.u32 (!%p858_p1), 1, %s721_s19  }
  0x3a   : > { %s535_s28 = sshll.u32 (!%p858_p1), %s884_s7, 7  ;;  %s257_s11 = scalar_lea.sflag (!%p858_p1), [#allocation3], %s884_s7 }
  0x3b   : > { %s888_s12 = scalar_lea.vmem (!%p858_p1), [#allocation2], %s535_s28 }
  0x3e   : > { %704 = dma.done.wait (%p806_p6), %s257_s11, 2048  }
  0x3f   : > { %706 = vsyncadd (%p806_p6), %s257_s11, 4294965248  ;;  %s267_s1 = scalar_lea.sflag [#allocation6], %s884_s7  ;;  %s895_s20 = scalar_lea.vmem [#allocation5], %s535_s28 }
  0x40   : > { %708 = dma.done.wait (%p806_p6), %s267_s1, 2048  }
  0x41   : > { %710 = vsyncadd (%p806_p6), %s267_s1, 4294965248  ;;  %v331_v0 = vld [vmem:[%s888_s12 + $0x78] sm:$0xff]  ;;  %v330_v1 = vld [vmem:[%s888_s12 + $0x70] sm:$0xff]  ;;  %p309_p12 = scmp.lt.s32.totalorder %s784_s22, 2  ;;  %s537_s8 = sshll.u32 %s884_s7, 3 }
  0x42   : > { %336 = vmatpush.msra.mxu0 %v331_v0  ;;  %v329_v2 = vld [vmem:[%s888_s12 + $0x68] sm:$0xff]  ;;  %v328_v3 = vld [vmem:[%s888_s12 + $0x60] sm:$0xff]  ;;  %v372_v4 = vld [vmem:[%s895_s20 + $0x78] sm:$0xff]  ;;  %s539_s25 = sshll.u32 %s784_s22, 3  ;;  %s308_s1 = scalar_lea.vmem [#allocation7], %s537_s8 }
  0x43   : > { %s908_s27 = scalar_select %p309_p12, %s784_s22, 2  ;;  %v327_v5 = vld [vmem:[%s888_s12 + $0x58] sm:$0xff]  ;;  %377 = vmatpush.msra.mxu1 %v372_v4  ;;  %v371_v6 = vld [vmem:[%s895_s20 + $0x70] sm:$0xff]  ;;  %v370_v7 = vld [vmem:[%s895_s20 + $0x68] sm:$0xff] }
  0x44   : > { %337 = vmatpush.msra.mxu0 %v330_v1  ;;  %v326_v8 = vld [vmem:[%s888_s12 + $0x50] sm:$0xff]  ;;  %v369_v9 = vld [vmem:[%s895_s20 + $0x60] sm:$0xff]  ;;  %v325_v10 = vld [vmem:[%s888_s12 + $0x48] sm:$0xff]  ;;  %s679_s26 = scalar_lea.hbm %s991_s5, 24 }
  0x45   : > { %378 = vmatpush.msra.mxu1 %v371_v6  ;;  %s311_s16 = scalar_lea.vmem %s988_s2, %s908_s27  ;;  %v368_v11 = vld [vmem:[%s895_s20 + $0x58] sm:$0xff]  ;;  %v324_v12 = vld [vmem:[%s888_s12 + $0x40] sm:$0xff]  ;;  %v367_v13 = vld [vmem:[%s895_s20 + $0x50] sm:$0xff]  ;;  %s314_s15 = scalar_lea.vmem %s990_s4, %s908_s27 }
  0x46   : > { %338 = vmatpush.msra.mxu0 %v329_v2  ;;  %v323_v14 = vld [vmem:[%s888_s12 + $0x38] sm:$0xff]  ;;  %v366_v15 = vld [vmem:[%s895_s20 + $0x48] sm:$0xff]  ;;  %v322_v16 = vld [vmem:[%s888_s12 + $0x30] sm:$0xff]  ;;  %s399_s27 = scalar_lea.sflag [#allocation4], %s884_s7 }
  0x47   : > { %379 = vmatpush.msra.mxu1 %v370_v7  ;;  %v365_v17 = vld [vmem:[%s895_s20 + $0x40] sm:$0xff]  ;;  %v321_v18 = vld [vmem:[%s888_s12 + $0x28] sm:$0xff]  ;;  %v364_v19 = vld [vmem:[%s895_s20 + $0x38] sm:$0xff] }
  0x48   : > { %339 = vmatpush.msra.mxu0 %v328_v3  ;;  %v320_v20 = vld [vmem:[%s888_s12 + $0x20] sm:$0xff]  ;;  %v363_v21 = vld [vmem:[%s895_s20 + $0x30] sm:$0xff]  ;;  %v319_v22 = vld [vmem:[%s888_s12 + $0x18] sm:$0xff] }
  0x49   : > { %380 = vmatpush.msra.mxu1 %v369_v9  ;;  %v362_v23 = vld [vmem:[%s895_s20 + $0x28] sm:$0xff]  ;;  %v318_v24 = vld [vmem:[%s888_s12 + $0x10] sm:$0xff]  ;;  %v361_v25 = vld [vmem:[%s895_s20 + $0x20] sm:$0xff] }
  0x4a   : > { %340 = vmatpush.msra.mxu0 %v327_v5  ;;  %v317_v26 = vld [vmem:[%s888_s12 + $0x8] sm:$0xff]  ;;  %v360_v27 = vld [vmem:[%s895_s20 + $0x18] sm:$0xff]  ;;  %v316_v28 = vld [vmem:[%s888_s12] sm:$0xff]  ;;  %s409_s12 = scalar_lea.hbm %s991_s5, %s539_s25 }
  0x4b   : > { %381 = vmatpush.msra.mxu1 %v368_v11  ;;  %v315_v29 = vld [vmem:[%s986_s0] sm:$0xff]  ;;  %v359_v30 = vld [vmem:[%s895_s20 + $0x10] sm:$0xff]  ;;  %v358_v31 = vld [vmem:[%s895_s20 + $0x8] sm:$0xff]  ;;  %s413_s29 = sshll.u32 %s409_s12, 4  ;;  %s414_s29 = int_to_ptr.hbm [resolvable:$true] %s413_s29 }
  0x4c   : > { %341 = vmatpush.msra.mxu0 %v326_v8  ;;  %v357_v32 = vld [vmem:[%s895_s20] sm:$0xff]  ;;  %s411_s20 = sshll.u32 %s308_s1, 4  ;;  %s673_s9 = sshra.s32 %s414_s29, 4  ;;  %s412_s20 = int_to_ptr.vmem [resolvable:$true] %s411_s20  ;;  %s674_s9 = int_to_ptr.hbm [resolvable:$true] %s673_s9 }
  0x4d   : > { %382 = vmatpush.msra.mxu1 %v367_v13  ;;  %v597_v33 = vld [vmem:[%s311_s16] ss:$0 sm:$0xff]  ;;  %s675_s16 = scalar_lea.hbm %s674_s9, 8  ;;  %p680_p1 = scmp.lt.s32.totalorder %s674_s9, %s991_s5 }
  0x4e   : > { %342 = vmatpush.msra.mxu0 %v325_v10  ;;  %v598_v37 = vld [vmem:[%s314_s15] ss:$0 sm:$0xff]  ;;  %p676_p6 = scmp.ne.s32.totalorder %s674_s9, %s675_s16  ;;  %p681_p3 = scmp.lt.s32.totalorder %s679_s26, %s675_s16 }
  0x4f   : > { %383 = vmatpush.msra.mxu1 %v366_v15 }
  0x50   : > { %343 = vmatpush.msra.mxu0 %v324_v12  ;;  %p677_p2 = pnand %p676_p6, %p812_p10  ;;  %p682_p13 = por %p681_p3, %p680_p1 }
  0x51   : > { %384 = vmatpush.msra.mxu1 %v365_v17 }
  0x52   : > { %344 = vmatpush.msra.mxu0 %v323_v14  ;;  %p678_p9 = pneg %p677_p2 }
  0x53   : > { %385 = vmatpush.msra.mxu1 %v364_v19 }
  0x54   : > { %345 = vmatpush.msra.mxu0 %v322_v16  ;;  %p683_p0 = pnand %p682_p13, %p678_p9 }
  0x55   : > { %386 = vmatpush.msra.mxu1 %v363_v21 }
  0x56   : > { %346 = vmatpush.msra.mxu0 %v321_v18 }
  0x57   : > { %387 = vmatpush.msra.mxu1 %v362_v23 }
  0x58   : > { %347 = vmatpush.msra.mxu0 %v320_v20 }
  0x59   : > { %388 = vmatpush.msra.mxu1 %v361_v25 }
  0x5a   : > { %348 = vmatpush.msra.mxu0 %v319_v22 }
  0x5b   : > { %389 = vmatpush.msra.mxu1 %v360_v27 }
  0x5c   : > { %349 = vmatpush.msra.mxu0 %v318_v24 }
  0x5d   : > { %390 = vmatpush.msra.mxu1 %v359_v30 }
  0x5e   : > { %350 = vmatpush.msra.mxu0 %v317_v26 }
  0x5f   : > { %391 = vmatpush.msra.mxu1 %v358_v31 }
  0x60   : > { %351 = vmatpush.msra.mxu0 %v316_v28 }
  0x61   : > { %352 = vmatmul.f32.vlgmr.msra.gmra.mxu0 %v315_v29  ;;  %392 = vmatpush.msra.mxu1 %v357_v32 }
  0xde   : > { %v353_v34 = vpop.f32.mrf.mxu0 }
  0xdf   : > { %v354_v35 = vadd.f32 %v597_v33, %v353_v34 }
  0xe1   : > { %v356_v36 = vmax.f32 %v354_v35, 0.0 }
  0xe3   : > { %393 = vmatmul.f32.vlgmr.msra.gmra.mxu1 %v356_v36 }
 0x160   : > { %v394_v38 = vpop.f32.mrf.mxu1 }
 0x161   : > { %v395_v39 = vadd.f32 %v598_v37, %v394_v38 }
 0x163   : > { %397 = vst [vmem:[%s308_s1] sm:$0xff] %v395_v39 }
 0x164   : > { %686 = shalt.err (!%p683_p0)
}
 0x165   : > { %548 = dma.vmem_to_hbm [thread:$0]  (%p812_p10), %s412_s20, 128, %s414_s29, %s399_s27  }
 0x166 PF: > { %p562_p4 = scmp.ge.s32.totalorder %s729_s21, 2  ;;  %s425_s7 = sand.u32 1, %s717_s18  }
 0x167   : > { %s426_s15 = scalar_lea.sflag [#allocation4], %s425_s7 }
 0x168   : > { %p558_p5 = pnand %p562_p4, %p816_p11 }
 0x16a   : > { %p559_p7 = pneg %p558_p5 }
 0x16c   : > { %712 = dma.done.wait (%p559_p7), %s426_s15, 128  }
 0x16d   : > { %714 = vsyncadd (%p559_p7), %s426_s15, 4294967168  ;;  %s1005_s17 = sld [smem:[#allocation11_spill]]  ;;  %p21_p8 = scmp.ge.s32.totalorder %s788_s24, 5  }
 0x16e   : > { %s1006_s20 = sld [smem:[#allocation12_spill]]  ;;  %s1007_s18 = smov %s721_s19 }
 0x16f   : > { %s1009_s21 = smov %s788_s24  ;;  %23 = sbr.rel (!%p21_p8) target bundleno = 9 (0x9), region = 104 }
 0x173   : > { %s1008_s19 = smov %s1005_s17 }
 0x174   :  { %432 = vsyncpa [#allocation3], 1 }
 0x175   :  { %434 = vsyncpa [#allocation3 + $0x1], 1 }
 0x176   :  { %435 = vsyncpa [#allocation6], 1 }
 0x177   :  { %437 = vsyncpa [#allocation6 + $0x1], 1 }
 0x178   :  { %438 = vsyncpa [#allocation4], 1 }
 0x179   :  { %440 = vsyncpa [#allocation4 + $0x1], 1 }

</bundles_post_ra>
